<compile_context>
chip_gen: v6e
topology: v6e:2x2x1
jax: 0.10.0
libtpu: 0.0.40
codegen_flags: <defaults>
</compile_context>

<pallas_src>
import functools

import jax
import jax.numpy as jnp
from jax.experimental import pallas as pl
from jax.experimental.pallas import tpu as pltpu

H1 = 16   # fc1 out features
H2 = 8    # fc2 out features (padded to H1 rows inside the packed params)


def _round_up(n, m):
    return ((n + m - 1) // m) * m


def _choose_tile_b(B, D):
    """Pick the batch tile (lane dim of the x block), multiple of 128."""
    d_pad = _round_up(max(D, 1), 16)          # bf16 sublane packing of (D, tb) tile
    # Target ~2 MiB per x DMA step so the ~0.35 us fixed per-grid-step overhead
    # is amortized (kernel is HBM-roofline bound on all generations).
    tb = (2 << 20) // (2 * d_pad)
    # Keep the double-buffered x tile <= 8 MiB: fits v5e's 16 MiB default scoped
    # VMEM and is far inside v6e/v7x budgets (no vmem_limit_bytes needed).
    tb = min(tb, (8 << 20) // (4 * d_pad))
    # v7x has 2 TensorCores: when the batch is big enough to split, make sure
    # the "parallel" grid axis has at least 2 steps.
    if B > 256:
        tb = min(tb, _round_up((B + 1) // 2, 128))
    tb = min(tb, _round_up(B, 128))
    return max(128, _round_up(tb, 128))


def _simple_nn_kernel(x_ref, wp_ref, bp_ref, o_ref, *, d):
    # Packed params (see pack_params):
    #   wp (bf16, (16, d+16)) : [:, 0:d]    = W1 (16, d)
    #                           [:, d:d+16] = W2 padded to (16,16) (rows 8..15 zero)
    #   bp (f32,  (16, 4))    : col0 = b1, col1 = b2 (padded), col2 = fc4 weight
    #                           (padded), bp[0,3] = fc4 bias
    w1 = wp_ref[:, 0:d]            # (16, d)   bf16
    w2 = wp_ref[:, d:d + H1]       # (16, 16)  bf16  (rows 8..15 are zero)
    b1 = bp_ref[:, 0:1]            # (16, 1)   f32
    b2 = bp_ref[:, 1:2]            # (16, 1)   f32  (rows 8..15 zero)
    w4 = bp_ref[:, 2:3]            # (16, 1)   f32  (rows 8..15 zero)
    b4 = bp_ref[0:1, 3:4]          # (1, 1)    f32

    x = x_ref[...]                 # (d, TB)   bf16, batch on the lane axis

    # fc1 + ReLU: standard-form MXU matmul, feature-major result (16, TB).
    h1 = jnp.dot(w1, x, preferred_element_type=jnp.float32)
    h1 = jnp.maximum(h1 + b1, 0.0)                       # (16, TB) f32
    # dropout1: identity in eval mode

    # fc2 + ReLU (output padded 8 -> 16 rows; padded rows are exactly 0 because
    # the padded w2/b2 rows are zero and ReLU(0 + 0) = 0).
    h2 = jnp.dot(w2, h1.astype(jnp.bfloat16),
                 preferred_element_type=jnp.float32)
    h2 = jnp.maximum(h2 + b2, 0.0)                       # (16, TB) f32
    # dropout2, dropout3: identity in eval mode

    # fc4 + sigmoid: N=1 layer as VPU multiply + sublane reduce (no MXU waste).
    z = jnp.sum(h2 * w4, axis=0, keepdims=True) + b4     # (1, TB) f32
    o_ref[...] = jax.nn.sigmoid(z)                       # lane-dense (1, TB) store


def pack_params(params):
    """Pack PyTorch-layout params (w:(out,in), b:(out,)) into 2 VMEM operands.
    Padded rows (8..15) of w2/b2/w4 are zero by construction, which keeps the
    fc4 reduce correct (ReLU(0+0)=0 and zero fc4 weight on padded rows)."""
    w1, b1, w2, b2, w4, b4 = params
    assert w1.shape[0] == H1 and w2.shape == (H2, H1) and w4.shape == (1, H2)
    d = w1.shape[1]
    wp = jnp.zeros((H1, d + H1), jnp.bfloat16)
    wp = wp.at[:, 0:d].set(w1.astype(jnp.bfloat16))
    wp = wp.at[0:H2, d:d + H1].set(w2.astype(jnp.bfloat16))
    bp = jnp.zeros((H1, 4), jnp.float32)
    bp = bp.at[:, 0].set(b1)
    bp = bp.at[0:H2, 1].set(b2)
    bp = bp.at[0:H2, 2].set(w4[0, :])
    bp = bp.at[0, 3].set(b4[0])
    return wp, bp


def simple_nn_forward(x, packed_params, *, tile_b=None):
    """x: (B, input_dim) float. Returns (B, 1) float32 (eval-mode forward)."""
    wp, bp = packed_params
    B, D = x.shape

    tb = _choose_tile_b(B, D) if tile_b is None else tile_b
    tb = max(128, _round_up(tb, 128))      # always lane-dense multiple of 128
    bp_rows = _round_up(B, tb)
    grid = bp_rows // tb

    # Single fused boundary pass: pad (tail only, <128 rows) + transpose + bf16
    # cast.  Batch lands on the lane axis; the kernel reads x exactly once more.
    xT = jnp.pad(x, ((0, bp_rows - B), (0, 0))).T.astype(jnp.bfloat16)   # (D, Bp)

    kernel = functools.partial(_simple_nn_kernel, d=D)

    out = pl.pallas_call(
        kernel,
        grid=(grid,),
        in_specs=[
            pl.BlockSpec((D, tb), lambda i: (0, i)),        # x tile, pipelined
            pl.BlockSpec(wp.shape, lambda i: (0, 0)),       # weights: VMEM-resident
            pl.BlockSpec(bp.shape, lambda i: (0, 0)),       # biases/fc4: resident
        ],
        out_specs=pl.BlockSpec((1, tb), lambda i: (0, i)),  # lane-dense slab
        out_shape=jax.ShapeDtypeStruct((1, bp_rows), jnp.float32),
        compiler_params=pltpu.CompilerParams(
            dimension_semantics=("parallel",),              # shards grid on v7x's 2 TCs
        ),
        cost_estimate=pl.CostEstimate(
            flops=2 * bp_rows * (D * H1 + H1 * H1 + H1),
            transcendentals=bp_rows,
            bytes_accessed=xT.size * 2 + bp_rows * 4 + wp.size * 2 + bp.size * 4,
        ),
    )(xT, wp, bp)

    return out[0, :B].reshape(B, 1)


def init_params(key, input_dim):
    """Deterministic init matching the PyTorch module's layer shapes.
    Weights stored PyTorch-style as (out, in); biases as (out,)."""
    keys = jax.random.split(key, 6)

    def linear(kw, kb, fan_in, fan_out):
        bound = 1.0 / (fan_in ** 0.5)
        w = jax.random.uniform(kw, (fan_out, fan_in), jnp.float32, -bound, bound)
        b = jax.random.uniform(kb, (fan_out,), jnp.float32, -bound, bound)
        return w, b

    w1, b1 = linear(keys[0], keys[1], input_dim, H1)
    w2, b2 = linear(keys[2], keys[3], H1, H2)
    w4, b4 = linear(keys[4], keys[5], H2, 1)
    return (w1, b1, w2, b2, w4, b4)


def ref_forward(x, params):
    """Pure-JAX reference mirroring the kernel's numerics (bf16 MXU operands,
    f32 accumulation, f32 elementwise, eval-mode dropout == identity)."""
    w1, b1, w2, b2, w4, b4 = params
    bf = lambda a: a.astype(jnp.bfloat16).astype(jnp.float32)
    h1 = jnp.maximum(bf(x) @ bf(w1).T + b1, 0.0)
    h2 = jnp.maximum(bf(h1) @ bf(w2).T + b2, 0.0)
    z = jnp.sum(h2 * w4[0], axis=-1, keepdims=True) + b4
    return jax.nn.sigmoid(z)


if __name__ == "__main__":
    key = jax.random.PRNGKey(0)
    kx, kp = jax.random.split(key)

    batch, input_dim = 8, 32
    x = jax.random.normal(kx, (batch, input_dim), jnp.float32)
    params = init_params(kp, input_dim)
    packed = pack_params(params)

    out = simple_nn_forward(x, packed)
    out = jax.block_until_ready(out)

    ref = ref_forward(x, params)
    assert out.shape == (batch, 1)
    err = float(jnp.max(jnp.abs(out - ref)))
    assert jnp.allclose(out, ref, atol=1e-3), f"mismatch vs reference, max err {err}"

    print("KERNEL_OK")
</pallas_src>

<mosaic_0001>
module attributes {stable_mosaic.version = 11 : i64} {
  func.func @_simple_nn_kernel(%arg0: i32, %arg1: memref<32x128xbf16, #tpu.memory_space<vmem>>, %arg2: memref<16x48xbf16, #tpu.memory_space<vmem>>, %arg3: memref<16x4xf32, #tpu.memory_space<vmem>>, %arg4: memref<1x128xf32, #tpu.memory_space<vmem>>) attributes {dimension_semantics = [#tpu.dimension_semantics<parallel>], iteration_bounds = array<i64: 1>, scalar_prefetch = 0 : i64, scratch_operands = 0 : i64, tpu.core_type = #tpu.core_type<tc>, window_params = [{transform_indices = @transform_0, window_bounds = array<i64: 32, 128>}, {pipeline_mode = #tpu.pipeline_mode<synchronous>, transform_indices = @transform_1, window_bounds = array<i64: 16, 48>}, {pipeline_mode = #tpu.pipeline_mode<synchronous>, transform_indices = @transform_2, window_bounds = array<i64: 16, 4>}, {transform_indices = @transform_3, window_bounds = array<i64: 1, 128>}]} {
    %c0 = arith.constant 0 : index
    %c0_0 = arith.constant 0 : index
    %0 = vector.load %arg2[%c0, %c0_0] : memref<16x48xbf16, #tpu.memory_space<vmem>>, vector<16x32xbf16>
    %c0_1 = arith.constant 0 : index
    %c32 = arith.constant 32 : index
    %1 = vector.load %arg2[%c0_1, %c32] : memref<16x48xbf16, #tpu.memory_space<vmem>>, vector<16x16xbf16>
    %c0_2 = arith.constant 0 : index
    %c0_3 = arith.constant 0 : index
    %2 = vector.load %arg3[%c0_2, %c0_3] : memref<16x4xf32, #tpu.memory_space<vmem>>, vector<16x1xf32>
    %c0_4 = arith.constant 0 : index
    %c1 = arith.constant 1 : index
    %3 = vector.load %arg3[%c0_4, %c1] : memref<16x4xf32, #tpu.memory_space<vmem>>, vector<16x1xf32>
    %c0_5 = arith.constant 0 : index
    %c2 = arith.constant 2 : index
    %4 = vector.load %arg3[%c0_5, %c2] : memref<16x4xf32, #tpu.memory_space<vmem>>, vector<16x1xf32>
    %c0_6 = arith.constant 0 : index
    %c3 = arith.constant 3 : index
    %5 = vector.load %arg3[%c0_6, %c3] : memref<16x4xf32, #tpu.memory_space<vmem>>, vector<1x1xf32>
    %c0_7 = arith.constant 0 : index
    %c0_8 = arith.constant 0 : index
    %6 = vector.load %arg1[%c0_7, %c0_8] : memref<32x128xbf16, #tpu.memory_space<vmem>>, vector<32x128xbf16>
    %cst = arith.constant dense<0.000000e+00> : vector<16x128xf32>
    %7 = tpu.matmul %0, %6, %cst {dimension_numbers = #tpu.dot_dimension_numbers<[1], [0], [0], [1], [0, 0, 1, 1], [], []>} : vector<16x32xbf16>, vector<32x128xbf16>, vector<16x128xf32> -> vector<16x128xf32>
    %8 = vector.broadcast %2 : vector<16x1xf32> to vector<16x128xf32>
    %9 = arith.addf %7, %8 : vector<16x128xf32>
    %cst_9 = arith.constant 0.000000e+00 : f32
    %10 = vector.broadcast %cst_9 : f32 to vector<16x128xf32>
    %11 = arith.maximumf %9, %10 : vector<16x128xf32>
    %12 = arith.truncf %11 : vector<16x128xf32> to vector<16x128xbf16>
    %cst_10 = arith.constant dense<0.000000e+00> : vector<16x128xf32>
    %13 = tpu.matmul %1, %12, %cst_10 {dimension_numbers = #tpu.dot_dimension_numbers<[1], [0], [0], [1], [0, 0, 1, 1], [], []>} : vector<16x16xbf16>, vector<16x128xbf16>, vector<16x128xf32> -> vector<16x128xf32>
    %14 = vector.broadcast %3 : vector<16x1xf32> to vector<16x128xf32>
    %15 = arith.addf %13, %14 : vector<16x128xf32>
    %cst_11 = arith.constant 0.000000e+00 : f32
    %16 = vector.broadcast %cst_11 : f32 to vector<16x128xf32>
    %17 = arith.maximumf %15, %16 : vector<16x128xf32>
    %18 = vector.broadcast %4 : vector<16x1xf32> to vector<16x128xf32>
    %19 = arith.mulf %17, %18 : vector<16x128xf32>
    %cst_12 = arith.constant dense<0.000000e+00> : vector<128xf32>
    %20 = vector.multi_reduction <add>, %19, %cst_12 [0] : vector<16x128xf32> to vector<128xf32>
    %21 = vector.shape_cast %20 : vector<128xf32> to vector<1x128xf32>
    %22 = vector.broadcast %5 : vector<1x1xf32> to vector<1x128xf32>
    %23 = arith.addf %21, %22 : vector<1x128xf32>
    %24 = arith.negf %23 : vector<1x128xf32>
    %25 = math.exp %24 : vector<1x128xf32>
    %cst_13 = arith.constant 1.000000e+00 : f32
    %26 = vector.broadcast %cst_13 : f32 to vector<1x128xf32>
    %27 = arith.addf %26, %25 : vector<1x128xf32>
    %28 = arith.divf %26, %27 : vector<1x128xf32>
    %c0_14 = arith.constant 0 : index
    %c0_15 = arith.constant 0 : index
    %29 = vector.load %arg4[%c0_14, %c0_15] : memref<1x128xf32, #tpu.memory_space<vmem>>, vector<1x128xf32>
    tpu.vector_store %arg4[%c0_14, %c0_15], %28 {strides = array<i32>} : memref<1x128xf32, #tpu.memory_space<vmem>>, vector<1x128xf32>,
    return
  }
  func.func @transform_0(%arg0: i32) -> (i32, i32) {
    %c0_i32 = arith.constant 0 : i32
    %c0_i32_0 = arith.constant 0 : i32
    return %c0_i32, %arg0 : i32, i32
  }
  func.func @transform_1(%arg0: i32) -> (i32, i32) {
    %c0_i32 = arith.constant 0 : i32
    %c0_i32_0 = arith.constant 0 : i32
    %c0_i32_1 = arith.constant 0 : i32
    return %c0_i32, %c0_i32_0 : i32, i32
  }
  func.func @transform_2(%arg0: i32) -> (i32, i32) {
    %c0_i32 = arith.constant 0 : i32
    %c0_i32_0 = arith.constant 0 : i32
    %c0_i32_1 = arith.constant 0 : i32
    return %c0_i32, %c0_i32_0 : i32, i32
  }
  func.func @transform_3(%arg0: i32) -> (i32, i32) {
    %c0_i32 = arith.constant 0 : i32
    %c0_i32_0 = arith.constant 0 : i32
    return %c0_i32, %arg0 : i32, i32
  }
}

</mosaic_0001>

<bundles_post_ra>
// kernel: tpu_custom_call.1
= control target key start
LH: loop header
LB: loop body
LE: loop exit
PB: predicated region body
PF: predicated region fallthrough
CT: control target
= control target key end

     0   :  { %8 = vsyncpa [#allocation3], 0  ;;  %s360_s0 = inlined_call_operand.vmem [shape: bf16[32,128], index: 0, kind: input, shape index: {}]   ;;  %s361_s1 = inlined_call_operand.hbm [shape: bf16[16,48], index: 1, kind: input, shape index: {}]   ;;  %s362_s2 = inlined_call_operand.vmem [shape: f32[16,4], index: 2, kind: input, shape index: {}]   ;;  %s363_s3 = inlined_call_operand.hbm [shape: f32[1,128], index: 3, kind: output, shape index: {}]  }
   0x1   :  { %9 = vsyncpa [#allocation4], 0  ;;  %s308_s12 = smov [#allocation2]  }
   0x2   :  { %s17_s13 = sshll.u32 %s308_s12, 4  ;;  %s18_s13 = int_to_ptr.vmem [resolvable:$true] %s17_s13 }
   0x3   :  { %s272_s14 = scalar_lea.vmem %s18_s13, 128  ;;  %p277_p1 = scmp.lt.s32.totalorder %s18_s13, %s18_s13 }
   0x4   :  { %p273_p0 = scmp.ne.s32.totalorder %s18_s13, %s272_s14  ;;  %p278_p2 = scmp.lt.s32.totalorder %s272_s14, %s272_s14 }
   0x6   :  { %p279_p3 = por %p278_p2, %p277_p1 }
   0x8   :  { %p280_p4 = pnand %p279_p3, %p273_p0 }
   0xa   :  { %283 = shalt.err (!%p280_p4)
}
   0xb   :  { %s309_s15 = smov 64   ;;  %s310_s16 = smov 4  }
   0xc   :  { %23 = dma.hbm_to_vmem [thread:$0]  %s361_s1, 128, %s18_s13, [#allocation3], %s309_s15, %s309_s15, %s310_s16  }
   0xd   :  { %304 = dma.done.wait [#allocation3], 128  }
   0xe   :  { %305 = vsyncadd [#allocation3], 4294967168  ;;  %v311_v0 = vmov 0.0   ;;  %vm312_vm0 = vmmov 0   ;;  %v313_v1 = vmov 0   ;;  %v257_v2 = vld [vmem:[%s360_s0 + $0x8] sm:$0xff]  }
   0xf   :  { %227 = vmatprep.subr.bf16.mxu0 %v311_v0  ;;  %231 = vmatprep.mubr.msk.bf16.mxu0 %vm312_vm0, %v311_v0  ;;  %v258_v3 = vld [vmem:[%s360_s0] sm:$0xff]   ;;  %s314_s24 = smov 96   ;;  %v33_v6 = vld [vmem:[%s362_s2 + $0x8] sm:$0xff]  ;;  %vm66_vm1 = vcmask 261120   ;;  %v315_v7 = vmov 1   ;;  %v316_v9 = vmov 2  }
  0x10   :  { %252 = vset.pattern.permute.xlu0 %v313_v1  ;;  %235 = vmatprep.subr.bf16.mxu1 %v311_v0  ;;  %v259_v4 = vld [vmem:[#allocation2] sm:$0xff]   ;;  %v317_v10 = vmov 3   ;;  %vm124_vm2 = vcmask 130048  }
  0x11   :  { %237 = vmatprep.mubr.msk.bf16.mxu1 %vm312_vm0, %v311_v0  ;;  %228 = vmatpush3.bf16.msra.mxu0 %v257_v2  ;;  %v32_v5 = vld [vmem:[%s362_s2] sm:$0xff] }
  0x12   :  { %229 = vmatprep.subr.bf16.mxu0 %v311_v0  ;;  %41 = vperm.xlu0 %252, %v32_v5   ;;  %v34_v8 = vld [vmem:[%s362_s2] sm:$0x1]  ;;  %s318_s2 = smov [#allocation5]  }
  0x13   :  { %122 = vrot.lane.b32.xlu1 %v259_v4, %s314_s24  ;;  %s207_s28 = sshll.u32 %s318_s2, 4  ;;  %s208_s28 = int_to_ptr.vmem [resolvable:$true] %s207_s28 }
  0x14   :  { %253 = vset.pattern.permute.xlu1 %v315_v7  ;;  %s284_s29 = scalar_lea.vmem %s208_s28, 16  ;;  %s288_s30 = scalar_lea.vmem %s208_s28, 32 }
  0x15   :  { %230 = vmatpush3.bf16.msra.mxu0 %v258_v3  ;;  %p285_p5 = scmp.ne.s32.totalorder %s208_s28, %s284_s29  ;;  %p289_p6 = scmp.lt.s32.totalorder %s208_s28, %s208_s28 }
  0x16   :  { %46 = vperm.xlu0 %252, %v33_v6   ;;  %p290_p7 = scmp.lt.s32.totalorder %s288_s30, %s284_s29 }
  0x17   :  { %115 = vperm.xlu1 %253, %v32_v5  }
  0x18   :  { %232 = vmatmul.mubr.msk.bf16.vlgmr.msra.gmra.mxu0 %vm66_vm1, %v259_v4  ;;  %p291_p8 = por %p290_p7, %p289_p6 }
  0x1a   :  { %254 = vset.pattern.permute.xlu0 %v315_v7  ;;  %p292_p9 = pnand %p291_p8, %p285_p5 }
  0x1b   :  { %119 = vperm.xlu0 %254, %v33_v6   ;;  %255 = vset.pattern.permute.xlu1 %v316_v9 }
  0x1c   :  { %172 = vperm.xlu1 %255, %v32_v5  }
  0x1f   :  { %256 = vset.pattern.permute.xlu0 %v317_v10 }
  0x20   :  { %190 = vperm.xlu0 %256, %v34_v8   ;;  %176 = vperm.xlu1 %255, %v33_v6  }
  0x85   :  { %v123_v22 = vpop.permute.xlu1 %122 }
  0x8d   :  { %v42_v11 = vpop.permute.xlu0 %41 }
  0x91   :  { %v47_v15 = vpop.permute.xlu0 %46 }
  0x92   :  { %v116_v23 = vpop.permute.xlu1 %115 }
  0x96   :  { %v120_v28 = vpop.permute.xlu0 %119 }
  0x97   :  { %v173_v25 = vpop.permute.xlu1 %172 }
  0x9b   :  { %v177_v34 = vpop.permute.xlu1 %176  ;;  %v191_v43 = vpop.permute.xlu0 %190 }
  0xd8   :  { %v104_v12 = vpop.f32.mrf.mxu0 }
  0xd9   :  { %v105_v14 = vadd.f32 %v104_v12, %v42_v11 }
  0xda   :  { %v233_v13 = vpop.f32.mrf.mxu0 }
  0xdb   :  { %v111_v19 = vmax.f32 %v105_v14, 0.0 }
  0xdc   :  { %v107_v16 = vpop.f32.mrf.mxu0 }
  0xdd   :  { %v108_v17 = vadd.f32 %v107_v16, %v47_v15 }
  0xde   :  { %v234_v18 = vpop.f32.mrf.mxu0 }
  0xdf   :  { %v112_v20 = vmax.f32 %v108_v17, 0.0 }
  0xe1   :  { %v113_v21 = vpack.c.bf16 %v112_v20, %v111_v19 }
  0xe3   :  { %236 = vmatpush3.bf16.msra.mxu1 %v113_v21 }
  0xe6   :  { %238 = vmatmul.mubr.msk.bf16.vlgmr.msra.gmra.mxu1 %vm124_vm2, %v123_v22 }
 0x1a6   :  { %v162_v24 = vpop.f32.mrf.mxu1 }
 0x1a7   :  { %v163_v26 = vadd.f32 %v162_v24, %v116_v23 }
 0x1a8   :  { %v239_v27 = vpop.f32.mrf.mxu1 }
 0x1a9   :  { %v169_v30 = vmax.f32 %v163_v26, 0.0 }
 0x1aa   :  { %v165_v29 = vpop.f32.mrf.mxu1 }
 0x1ab   :  { %v166_v31 = vadd.f32 %v165_v29, %v120_v28  ;;  %v179_v35 = vmul.f32 %v173_v25, %v169_v30 }
 0x1ac   :  { %v240_v32 = vpop.f32.mrf.mxu1 }
 0x1ad   :  { %v170_v33 = vmax.f32 %v166_v31, 0.0 }
 0x1af   :  { %v180_v36 = vmul.f32 %v177_v34, %v170_v33 }
 0x1b1   :  { %v181_v37 = vadd.f32 %v180_v36, %v179_v35 }
 0x1b3   :  { %v182_v38 = vrot.slane %v181_v37, 4 }
 0x1b5   :  { %v183_v39 = vadd.f32 %v182_v38, %v181_v37 }
 0x1b7   :  { %v184_v40 = vrot.slane %v183_v39, 2 }
 0x1b9   :  { %v185_v41 = vadd.f32 %v184_v40, %v183_v39 }
 0x1bb   :  { %v186_v42 = vrot.slane %v185_v41, 1 }
 0x1bd   :  { %v187_v44 = vadd.f32 %v186_v42, %v185_v41 }
 0x1bf   :  { %v193_v45 = vadd.f32 %v191_v43, %v187_v44 }
 0x1c1   :  { %v221_v46 = vmul.f32 -1.442695, %v193_v45 }
 0x1c3   :  { %260 = vpow2.f32 %v221_v46 }
 0x1d0   :  { %v261_v47 = vpop.eup %260 }
 0x1d1   :  { %v197_v48 = vadd.f32 1.0, %v261_v47 }
 0x1d3   :  { %262 = vrcp.f32 %v197_v48 }
 0x1e0   :  { %v263_v49 = vpop.eup %262 }
 0x1e1   :  { %200 = vst [vmem:[#allocation5] sm:$0x1] %v263_v49 }
 0x1e2   :  { %295 = shalt.err (!%p292_p9)
}
 0x1e3   :  { %210 = dma.vmem_to_hbm [thread:$0]  %s208_s28, 16, %s363_s3, [#allocation4]  }
 0x1e4   :  { %306 = dma.done.wait [#allocation4], 16  }
 0x1e5   :  { %307 = vsyncadd [#allocation4], 4294967280 }
 0x1e6   :  { %214 = vsyncpa [#allocation3], 1 }
 0x1e7   :  { %215 = vsyncpa [#allocation4], 1 }

</bundles_post_ra>
